<compile_context>
chip_gen: v5e
topology: v5e:2x2
jax: 0.10.0
libtpu: 0.0.40
codegen_flags: <defaults>
</compile_context>

<pallas_src>
import jax
import jax.numpy as jnp
from jax.experimental import pallas as pl
from jax.experimental.pallas import tpu as pltpu

_LANE = 128                 # lane padding target (last dim)
_SUBLANE = 16               # batch-tile granularity (safe for f32 and bf16)
_MAX_BATCH_TILE = 512       # max rows per grid step
_MIB = 1024 * 1024
_HAS_BUFFERED = hasattr(pl, "Buffered")


def _cdiv(a, b):
    return -(-a // b)


def _round_up(x, m):
    return _cdiv(x, m) * m


def _tpu_caps():
    """(per-core VMEM capacity bytes, #TensorCores sharing the parallel axis)."""
    kind = ""
    try:
        kind = jax.devices()[0].device_kind.lower()
    except Exception:
        pass
    is_v7 = "v7" in kind
    n_cores = 2 if is_v7 else 1
    vmem_cap = 64 * _MIB if is_v7 else 128 * _MIB
    try:
        vmem_cap = min(vmem_cap, int(pltpu.get_tpu_info().vmem_capacity_bytes))
    except Exception:
        pass
    return vmem_cap, n_cores


# --------------------------------------------------------------------------
# Kernels
# --------------------------------------------------------------------------
def _make_resident_kernel(n_layers, compute_dtype):
    """All (padded) parameters resident in VMEM; one fused grid step per batch tile."""
    if n_layers > 0:
        def kernel(x_ref, wh_ref, bh_ref, wo_ref, bo_ref, out_ref):
            h = x_ref[...].astype(compute_dtype)            # cast inside kernel
            for l in range(n_layers):                       # static unroll
                acc = jnp.dot(h, wh_ref[l], preferred_element_type=jnp.float32)
                acc = acc + bh_ref[l]                       # f32 bias on f32 acc
                h = jnp.maximum(acc, 0.0).astype(compute_dtype)
            y = jnp.dot(h, wo_ref[...], preferred_element_type=jnp.float32) + bo_ref[...]
            out_ref[...] = y.astype(out_ref.dtype)
    else:
        def kernel(x_ref, wo_ref, bo_ref, out_ref):
            h = x_ref[...].astype(compute_dtype)
            y = jnp.dot(h, wo_ref[...], preferred_element_type=jnp.float32) + bo_ref[...]
            out_ref[...] = y.astype(out_ref.dtype)
    return kernel


def _make_streaming_kernel(n_layers, compute_dtype):
    """Layer axis on the grid: one hidden-layer weight slab resident at a time."""
    def kernel(x_ref, wh_ref, bh_ref, wo_ref, bo_ref, out_ref, h_scratch):
        l = pl.program_id(1)

        @pl.when(l == 0)
        def _():
            h_scratch[...] = x_ref[...].astype(h_scratch.dtype)

        @pl.when(l < n_layers)
        def _():
            acc = jnp.dot(h_scratch[...], wh_ref[0],
                          preferred_element_type=jnp.float32) + bh_ref[0]
            h_scratch[...] = jnp.maximum(acc, 0.0).astype(h_scratch.dtype)

        @pl.when(l == n_layers)
        def _():
            y = jnp.dot(h_scratch[...], wo_ref[...],
                        preferred_element_type=jnp.float32) + bo_ref[...]
            out_ref[...] = y.astype(out_ref.dtype)
    return kernel


# --------------------------------------------------------------------------
# Parameter preparation (one-time pad + cast; no per-call HBM passes)
# --------------------------------------------------------------------------
def prepare_mlp_probe(params, compute_dtype=jnp.float32):
    """Pad + cast the probe parameters once.

    params: list of (W, b) pairs, W stored as [in, out] (== torch weight.T),
            b as [out] or [1, out]; last pair is the classifier head.
    compute_dtype: matmul operand dtype.  float32 (default) matches the torch
            module; bfloat16 is the explicit fast path (f32 accumulation).
    """
    assert len(params) >= 1
    compute_dtype = jnp.dtype(compute_dtype)
    n_layers = len(params) - 1
    H = int(params[0][0].shape[0])
    num_classes = int(params[-1][0].shape[1])
    H_pad = _round_up(H, _LANE)
    C_pad = _round_up(num_classes, _LANE)

    def pad_w(w, rows, cols):
        w = jnp.asarray(w, compute_dtype)
        return jnp.pad(w, ((0, rows - w.shape[0]), (0, cols - w.shape[1])))

    def pad_b(b, cols):
        b = jnp.asarray(b, jnp.float32).reshape(1, -1)
        return jnp.pad(b, ((0, 0), (0, cols - b.shape[1])))

    if n_layers > 0:
        for w, _ in params[:-1]:
            assert w.shape == (H, H), "hidden layers must be hidden_size x hidden_size"
        wh = jnp.stack([pad_w(w, H_pad, H_pad) for w, _ in params[:-1]])   # [L, Hp, Hp]
        bh = jnp.stack([pad_b(b, H_pad) for _, b in params[:-1]])          # [L, 1, Hp]
    else:
        wh, bh = None, None
    assert int(params[-1][0].shape[0]) == H
    wo = pad_w(params[-1][0], H_pad, C_pad)                                # [Hp, Cp]
    bo = pad_b(params[-1][1], C_pad)                                       # [1, Cp]

    arrays = [a for a in (wh, bh, wo, bo) if a is not None]
    param_bytes = sum(int(a.size) * a.dtype.itemsize for a in arrays)
    return dict(n_layers=n_layers, H=H, num_classes=num_classes,
                H_pad=H_pad, C_pad=C_pad, compute_dtype=compute_dtype,
                wh=wh, bh=bh, wo=wo, bo=bo, param_bytes=int(param_bytes))


# --------------------------------------------------------------------------
# Forward
# --------------------------------------------------------------------------
def mlp_probe_forward(x, prepared, *, batch_tile=None, force_stream=False):
    """Fused probe forward pass: n_layers x (Linear+ReLU) -> Linear."""
    n_layers = prepared["n_layers"]
    H, H_pad, C_pad = prepared["H"], prepared["H_pad"], prepared["C_pad"]
    num_classes = prepared["num_classes"]
    cdt = prepared["compute_dtype"]
    wh, bh, wo, bo = prepared["wh"], prepared["bh"], prepared["wo"], prepared["bo"]
    param_bytes = prepared["param_bytes"]

    lead = x.shape[:-1]
    assert x.shape[-1] == H, f"expected last dim {H}, got {x.shape}"
    x2 = x.reshape(-1, H)
    B = x2.shape[0]
    out_dtype = x.dtype
    xbytes = jnp.dtype(x.dtype).itemsize
    obytes = jnp.dtype(out_dtype).itemsize
    cbytes = cdt.itemsize

    vmem_cap, n_cores = _tpu_caps()
    budget = int(vmem_cap * 0.85)

    # Batch tiling: minimal padding; no forced splits on single-TC v5e/v6e;
    # even step count on v7x so both TensorCores stay busy.
    if batch_tile is not None:
        bt0 = max(_SUBLANE, _round_up(int(batch_tile), _SUBLANE))
        ns0 = _cdiv(B, bt0)
    else:
        ns0 = _cdiv(B, _MAX_BATCH_TILE)
        if n_cores > 1 and B >= n_cores * _SUBLANE:
            ns0 = _round_up(ns0, n_cores)
        bt0 = _round_up(_cdiv(B, ns0), _SUBLANE)

    def resident_vmem(bt, pbuf):
        return (pbuf * param_bytes
                + 2 * bt * H_pad * xbytes          # double-buffered x tiles
                + 2 * bt * C_pad * obytes          # double-buffered out tiles
                + 3 * bt * H_pad * 4)              # f32 accumulator / relu temporaries

    def stream_vmem(bt):
        layer_slab = H_pad * H_pad * cbytes + H_pad * 4
        head = H_pad * C_pad * cbytes + C_pad * 4
        return (2 * layer_slab + 2 * head
                + 2 * bt * H_pad * xbytes
                + bt * H_pad * cbytes              # activation carry scratch
                + 2 * bt * C_pad * obytes
                + 3 * bt * H_pad * 4)

    def run(buffered):
        pbuf = 1 if buffered else 2
        bt, ns = bt0, ns0
        use_stream = n_layers >= 1 and (force_stream or resident_vmem(bt, pbuf) > budget)
        if use_stream:
            est = stream_vmem(bt)
            if est > budget and stream_vmem(_SUBLANE) <= budget:
                while est > budget and bt > _SUBLANE:
                    bt = max(_SUBLANE, _round_up(bt // 2, _SUBLANE))
                    ns = _cdiv(B, bt)
                    if n_cores > 1 and B >= n_cores * _SUBLANE:
                        ns = _round_up(ns, n_cores)
                    est = stream_vmem(bt)
            # TODO(synk): if a single padded layer slab alone exceeds the VMEM
            # budget, additionally N-tile the layer's output columns (inner
            # pltpu.emit_pipeline over 512-1024-column slabs, pl.Buffered(2))
            # instead of shrinking the batch tile.
        else:
            est = resident_vmem(bt, pbuf)

        B_pad = bt * ns
        if B_pad != B or H_pad != H:
            # Keep x in its original dtype; the kernel casts to compute_dtype.
            x_p = jnp.pad(x2, ((0, B_pad - B), (0, H_pad - H)))
        else:
            x_p = x2

        # Always set the scoped-VMEM limit, clamped to the device capacity.
        vmem_limit = int(min(max(int(est * 3 // 2), 32 * _MIB), int(vmem_cap * 0.9)))

        weight_passes = ns if use_stream else 1
        cost = pl.CostEstimate(
            flops=2 * B_pad * (n_layers * H_pad * H_pad + H_pad * C_pad),
            transcendentals=0,
            bytes_accessed=int(weight_passes * param_bytes
                               + B_pad * H_pad * xbytes + B_pad * C_pad * obytes))

        if use_stream:
            last = n_layers - 1
            in_specs = [
                pl.BlockSpec((bt, H_pad), lambda i, l: (i, 0)),
                pl.BlockSpec((1, H_pad, H_pad),
                             lambda i, l: (jnp.minimum(l, last), 0, 0)),
                pl.BlockSpec((1, 1, H_pad),
                             lambda i, l: (jnp.minimum(l, last), 0, 0)),
                pl.BlockSpec(wo.shape, lambda i, l: (0, 0)),
                pl.BlockSpec(bo.shape, lambda i, l: (0, 0)),
            ]
            out_specs = pl.BlockSpec((bt, C_pad), lambda i, l: (i, 0))
            grid = (ns, n_layers + 1)
            scratch = [pltpu.VMEM((bt, H_pad), cdt)]
            semantics = ("parallel", "arbitrary")
            kernel = _make_streaming_kernel(n_layers, cdt)
            args = (x_p, wh, bh, wo, bo)
        else:
            def param_spec(shape):
                nd = len(shape)

                def idx(i):
                    return (0,) * nd
                if buffered:
                    # Grid-invariant block: single-buffer to halve VMEM residency.
                    return pl.BlockSpec(shape, idx, pipeline_mode=pl.Buffered(1))
                return pl.BlockSpec(shape, idx)

            in_specs = [pl.BlockSpec((bt, H_pad), lambda i: (i, 0))]
            args = [x_p]
            if n_layers > 0:
                in_specs += [param_spec(wh.shape), param_spec(bh.shape)]
                args += [wh, bh]
            in_specs += [param_spec(wo.shape), param_spec(bo.shape)]
            args += [wo, bo]
            out_specs = pl.BlockSpec((bt, C_pad), lambda i: (i, 0))
            grid = (ns,)
            scratch = []
            semantics = ("parallel",)
            kernel = _make_resident_kernel(n_layers, cdt)
            args = tuple(args)

        fn = pl.pallas_call(
            kernel,
            out_shape=jax.ShapeDtypeStruct((B_pad, C_pad), out_dtype),
            grid_spec=pltpu.PrefetchScalarGridSpec(
                num_scalar_prefetch=0,
                grid=grid,
                in_specs=in_specs,
                out_specs=out_specs,
                scratch_shapes=scratch,
            ),
            compiler_params=pltpu.CompilerParams(
                dimension_semantics=semantics,
                vmem_limit_bytes=vmem_limit,
            ),
            cost_estimate=cost,
        )
        return fn(*args)

    try:
        out_padded = run(buffered=_HAS_BUFFERED)
    except (TypeError, ValueError, NotImplementedError):
        # Narrow fallback: only for builds that reject pipeline_mode=pl.Buffered(1)
        # on grid-invariant param blocks.  The retry re-derives the VMEM budget
        # with double-buffered params and may therefore switch to the streaming
        # path instead of blowing v7x's 64 MiB/TC VMEM.
        if not _HAS_BUFFERED:
            raise
        out_padded = run(buffered=False)

    out = out_padded[:B, :num_classes]
    return out.reshape(*lead, num_classes)


# --------------------------------------------------------------------------
# Init + pure-JAX reference
# --------------------------------------------------------------------------
def init_mlp_probe_params(key, hidden_size, num_classes, n_layers, dtype=jnp.float32):
    """U(-1/sqrt(fan_in), +1/sqrt(fan_in)) init, matching nn.Linear defaults.
    Weights are stored as [in, out] (== torch linear.weight.T)."""
    params = []
    dims = [(hidden_size, hidden_size)] * n_layers + [(hidden_size, num_classes)]
    for fan_in, fan_out in dims:
        key, kw, kb = jax.random.split(key, 3)
        bound = float(fan_in) ** -0.5
        w = jax.random.uniform(kw, (fan_in, fan_out), dtype, -bound, bound)
        b = jax.random.uniform(kb, (1, fan_out), dtype, -bound, bound)
        params.append((w, b))
    return params


def mlp_probe_reference(x, params, compute_dtype=jnp.float32):
    """Pure-JAX reference with the same operand rounding as the kernel."""
    precision = (jax.lax.Precision.HIGHEST
                 if jnp.dtype(compute_dtype) == jnp.float32 else None)
    h = x.astype(compute_dtype)
    for w, b in params[:-1]:
        a = jnp.dot(h, jnp.asarray(w, compute_dtype), precision=precision,
                    preferred_element_type=jnp.float32) + jnp.asarray(b, jnp.float32)
        h = jnp.maximum(a, 0.0).astype(compute_dtype)
    w, b = params[-1]
    y = jnp.dot(h, jnp.asarray(w, compute_dtype), precision=precision,
                preferred_element_type=jnp.float32) + jnp.asarray(b, jnp.float32)
    return y.astype(x.dtype)


# --------------------------------------------------------------------------
# Self-test
# --------------------------------------------------------------------------
if __name__ == "__main__":
    hidden_size, num_classes, n_layers, batch = 32, 8, 2, 8

    key = jax.random.PRNGKey(0)
    key, kx = jax.random.split(key)
    x = jax.random.normal(kx, (batch, hidden_size), jnp.float32)
    params = init_mlp_probe_params(key, hidden_size, num_classes, n_layers)

    ref32 = mlp_probe_reference(x, params, jnp.float32)

    # 1) f32 parity path (default compute dtype), all params resident in VMEM.
    prep32 = prepare_mlp_probe(params)                        # compute_dtype=f32
    out32 = jax.block_until_ready(mlp_probe_forward(x, prep32))
    assert out32.shape == (batch, num_classes), out32.shape
    err32 = float(jnp.max(jnp.abs(out32 - ref32)))
    # Tolerance covers possible MXU f32 pass-count differences vs the XLA reference.
    assert err32 < 2e-2, f"f32 resident-path max abs err {err32}"

    # 2) The same probe through the layer-streaming path (big-model / v7x path).
    out_s = jax.block_until_ready(mlp_probe_forward(x, prep32, force_stream=True))
    assert out_s.shape == (batch, num_classes), out_s.shape
    err_s = float(jnp.max(jnp.abs(out_s - ref32)))
    assert err_s < 2e-2, f"f32 streaming-path max abs err {err_s}"

    # 3) Explicit bf16-weight fast path, checked against a bf16 reference.
    prep16 = prepare_mlp_probe(params, compute_dtype=jnp.bfloat16)
    out16 = jax.block_until_ready(mlp_probe_forward(x, prep16))
    ref16 = mlp_probe_reference(x, params, jnp.bfloat16)
    assert out16.shape == (batch, num_classes), out16.shape
    err16 = float(jnp.max(jnp.abs(out16 - ref16)))
    assert err16 < 5e-2, f"bf16 path max abs err {err16}"

    print("KERNEL_OK")
</pallas_src>

<mosaic_0001>
module attributes {stable_mosaic.version = 11 : i64} {
  func.func @kernel(%arg0: i32, %arg1: memref<16x128xf32, #tpu.memory_space<vmem>>, %arg2: memref<2x128x128xf32, #tpu.memory_space<vmem>>, %arg3: memref<2x1x128xf32, #tpu.memory_space<vmem>>, %arg4: memref<128x128xf32, #tpu.memory_space<vmem>>, %arg5: memref<1x128xf32, #tpu.memory_space<vmem>>, %arg6: memref<16x128xf32, #tpu.memory_space<vmem>>) attributes {dimension_semantics = [#tpu.dimension_semantics<parallel>], iteration_bounds = array<i64: 1>, scalar_prefetch = 0 : i64, scratch_operands = 0 : i64, tpu.core_type = #tpu.core_type<tc>, window_params = [{transform_indices = @transform_0, window_bounds = array<i64: 16, 128>}, {pipeline_mode = #tpu.pipeline_mode<synchronous>, transform_indices = @transform_1, window_bounds = array<i64: 2, 128, 128>}, {pipeline_mode = #tpu.pipeline_mode<synchronous>, transform_indices = @transform_2, window_bounds = array<i64: 2, 1, 128>}, {pipeline_mode = #tpu.pipeline_mode<synchronous>, transform_indices = @transform_3, window_bounds = array<i64: 128, 128>}, {pipeline_mode = #tpu.pipeline_mode<synchronous>, transform_indices = @transform_4, window_bounds = array<i64: 1, 128>}, {transform_indices = @transform_5, window_bounds = array<i64: 16, 128>}]} {
    %c0 = arith.constant 0 : index
    %c0_0 = arith.constant 0 : index
    %0 = vector.load %arg1[%c0, %c0_0] : memref<16x128xf32, #tpu.memory_space<vmem>>, vector<16x128xf32>
    %c0_1 = arith.constant 0 : index
    %c0_2 = arith.constant 0 : index
    %c0_3 = arith.constant 0 : index
    %1 = vector.load %arg2[%c0_1, %c0_2, %c0_3] : memref<2x128x128xf32, #tpu.memory_space<vmem>>, vector<1x128x128xf32>
    %2 = vector.shape_cast %1 : vector<1x128x128xf32> to vector<128x128xf32>
    %cst = arith.constant dense<0.000000e+00> : vector<16x128xf32>
    %3 = tpu.matmul %0, %2, %cst {dimension_numbers = #tpu.dot_dimension_numbers<[1], [0], [0], [1], [0, 0, 1, 1], [], []>} : vector<16x128xf32>, vector<128x128xf32>, vector<16x128xf32> -> vector<16x128xf32>
    %c0_4 = arith.constant 0 : index
    %c0_5 = arith.constant 0 : index
    %c0_6 = arith.constant 0 : index
    %4 = vector.load %arg3[%c0_4, %c0_5, %c0_6] : memref<2x1x128xf32, #tpu.memory_space<vmem>>, vector<1x1x128xf32>
    %5 = vector.shape_cast %4 : vector<1x1x128xf32> to vector<1x128xf32>
    %6 = vector.broadcast %5 : vector<1x128xf32> to vector<16x128xf32>
    %7 = arith.addf %3, %6 : vector<16x128xf32>
    %cst_7 = arith.constant 0.000000e+00 : f32
    %8 = vector.broadcast %cst_7 : f32 to vector<16x128xf32>
    %9 = arith.maximumf %7, %8 : vector<16x128xf32>
    %c1 = arith.constant 1 : index
    %c0_8 = arith.constant 0 : index
    %c0_9 = arith.constant 0 : index
    %10 = vector.load %arg2[%c1, %c0_8, %c0_9] : memref<2x128x128xf32, #tpu.memory_space<vmem>>, vector<1x128x128xf32>
    %11 = vector.shape_cast %10 : vector<1x128x128xf32> to vector<128x128xf32>
    %cst_10 = arith.constant dense<0.000000e+00> : vector<16x128xf32>
    %12 = tpu.matmul %9, %11, %cst_10 {dimension_numbers = #tpu.dot_dimension_numbers<[1], [0], [0], [1], [0, 0, 1, 1], [], []>} : vector<16x128xf32>, vector<128x128xf32>, vector<16x128xf32> -> vector<16x128xf32>
    %c1_11 = arith.constant 1 : index
    %c0_12 = arith.constant 0 : index
    %c0_13 = arith.constant 0 : index
    %13 = vector.load %arg3[%c1_11, %c0_12, %c0_13] : memref<2x1x128xf32, #tpu.memory_space<vmem>>, vector<1x1x128xf32>
    %14 = vector.shape_cast %13 : vector<1x1x128xf32> to vector<1x128xf32>
    %15 = vector.broadcast %14 : vector<1x128xf32> to vector<16x128xf32>
    %16 = arith.addf %12, %15 : vector<16x128xf32>
    %cst_14 = arith.constant 0.000000e+00 : f32
    %17 = vector.broadcast %cst_14 : f32 to vector<16x128xf32>
    %18 = arith.maximumf %16, %17 : vector<16x128xf32>
    %c0_15 = arith.constant 0 : index
    %c0_16 = arith.constant 0 : index
    %19 = vector.load %arg4[%c0_15, %c0_16] : memref<128x128xf32, #tpu.memory_space<vmem>>, vector<128x128xf32>
    %cst_17 = arith.constant dense<0.000000e+00> : vector<16x128xf32>
    %20 = tpu.matmul %18, %19, %cst_17 {dimension_numbers = #tpu.dot_dimension_numbers<[1], [0], [0], [1], [0, 0, 1, 1], [], []>} : vector<16x128xf32>, vector<128x128xf32>, vector<16x128xf32> -> vector<16x128xf32>
    %c0_18 = arith.constant 0 : index
    %c0_19 = arith.constant 0 : index
    %21 = vector.load %arg5[%c0_18, %c0_19] : memref<1x128xf32, #tpu.memory_space<vmem>>, vector<1x128xf32>
    %22 = vector.broadcast %21 : vector<1x128xf32> to vector<16x128xf32>
    %23 = arith.addf %20, %22 : vector<16x128xf32>
    %c0_20 = arith.constant 0 : index
    %c0_21 = arith.constant 0 : index
    %24 = vector.load %arg6[%c0_20, %c0_21] : memref<16x128xf32, #tpu.memory_space<vmem>>, vector<16x128xf32>
    tpu.vector_store %arg6[%c0_20, %c0_21], %23 {strides = array<i32>} : memref<16x128xf32, #tpu.memory_space<vmem>>, vector<16x128xf32>,
    return
  }
  func.func @transform_0(%arg0: i32) -> (i32, i32) {
    %c0_i32 = arith.constant 0 : i32
    %c0_i32_0 = arith.constant 0 : i32
    return %arg0, %c0_i32 : i32, i32
  }
  func.func @transform_1(%arg0: i32) -> (i32, i32, i32) {
    %c0_i32 = arith.constant 0 : i32
    %c0_i32_0 = arith.constant 0 : i32
    %c0_i32_1 = arith.constant 0 : i32
    %c0_i32_2 = arith.constant 0 : i32
    return %c0_i32, %c0_i32_0, %c0_i32_1 : i32, i32, i32
  }
  func.func @transform_2(%arg0: i32) -> (i32, i32, i32) {
    %c0_i32 = arith.constant 0 : i32
    %c0_i32_0 = arith.constant 0 : i32
    %c0_i32_1 = arith.constant 0 : i32
    %c0_i32_2 = arith.constant 0 : i32
    return %c0_i32, %c0_i32_0, %c0_i32_1 : i32, i32, i32
  }
  func.func @transform_3(%arg0: i32) -> (i32, i32) {
    %c0_i32 = arith.constant 0 : i32
    %c0_i32_0 = arith.constant 0 : i32
    %c0_i32_1 = arith.constant 0 : i32
    return %c0_i32, %c0_i32_0 : i32, i32
  }
  func.func @transform_4(%arg0: i32) -> (i32, i32) {
    %c0_i32 = arith.constant 0 : i32
    %c0_i32_0 = arith.constant 0 : i32
    %c0_i32_1 = arith.constant 0 : i32
    return %c0_i32, %c0_i32_0 : i32, i32
  }
  func.func @transform_5(%arg0: i32) -> (i32, i32) {
    %c0_i32 = arith.constant 0 : i32
    %c0_i32_0 = arith.constant 0 : i32
    return %arg0, %c0_i32 : i32, i32
  }
}

</mosaic_0001>

<bundles_post_ra>
// kernel: tpu_custom_call.1
= control target key start
LH: loop header
LB: loop body
LE: loop exit
PB: predicated region body
PF: predicated region fallthrough
CT: control target
= control target key end

     0   :  { %10 = vsyncpa [#allocation3], 0  ;;  %s469_s0 = inlined_call_operand.hbm [shape: f32[16,128], index: 0, kind: input, shape index: {}]   ;;  %s470_s1 = inlined_call_operand.hbm [shape: f32[2,128,128], index: 1, kind: input, shape index: {}]   ;;  %s471_s2 = inlined_call_operand.hbm [shape: f32[2,1,128], index: 2, kind: input, shape index: {}]   ;;  %s472_s3 = inlined_call_operand.hbm [shape: f32[128,128], index: 3, kind: input, shape index: {}]   ;;  %s473_s4 = inlined_call_operand.vmem [shape: f32[1,128], index: 4, kind: input, shape index: {}]   ;;  %s474_s5 = inlined_call_operand.hbm [shape: f32[16,128], index: 5, kind: output, shape index: {}]  }
   0x1   :  { %11 = vsyncpa [#allocation6], 0 }
   0x2   :  { %12 = vsyncpa [#allocation9], 0 }
   0x3   :  { %13 = vsyncpa [#allocation4], 0  ;;  %s31_s20 = sshll.u32 %s470_s1, 4  ;;  %s400_s21 = smov [#allocation5]   ;;  %s32_s20 = int_to_ptr.hbm [resolvable:$true] %s31_s20 }
   0x4   :  { %s33_s22 = sshll.u32 %s400_s21, 4  ;;  %s18_s25 = sshll.u32 %s469_s0, 4  ;;  %s34_s22 = int_to_ptr.vmem [resolvable:$true] %s33_s22  ;;  %s19_s25 = int_to_ptr.hbm [resolvable:$true] %s18_s25 }
   0x5   :  { %s401_s26 = smov 128   ;;  %s402_s27 = smov 8  }
   0x6   :  { %39 = dma.hbm_to_vmem [thread:$0]  %s32_s20, 4096, %s34_s22, [#allocation6], %s401_s26, %s401_s26, %s402_s27  }
   0x7   :  { %s403_s28 = smov [#allocation2]   ;;  %s44_s1 = sshll.u32 %s471_s2, 4  ;;  %s45_s1 = int_to_ptr.hbm [resolvable:$true] %s44_s1 }
   0x8   :  { %s20_s29 = sshll.u32 %s403_s28, 4  ;;  %s404_s0 = smov [#allocation7]   ;;  %s21_s29 = int_to_ptr.vmem [resolvable:$true] %s20_s29 }
   0x9   :  { %26 = dma.hbm_to_vmem [thread:$0]  %s19_s25, 256, %s21_s29, [#allocation3], %s401_s26, %s401_s26, %s402_s27  }
   0xa   :  { %s46_s7 = sshll.u32 %s404_s0, 4  ;;  %s57_s10 = sshll.u32 %s472_s3, 4  ;;  %s47_s7 = int_to_ptr.vmem [resolvable:$true] %s46_s7  ;;  %s58_s10 = int_to_ptr.hbm [resolvable:$true] %s57_s10 }
   0xb   :  { %s405_s11 = smov 16   ;;  %s406_s12 = smov 1  }
   0xc   :  { %52 = dma.hbm_to_vmem [thread:$0]  %s45_s1, 32, %s47_s7, [#allocation6], %s405_s11, %s405_s11, %s406_s12  }
   0xd   :  { %s407_s13 = smov [#allocation8]  }
   0xe   :  { %s59_s14 = sshll.u32 %s407_s13, 4  ;;  %s60_s14 = int_to_ptr.vmem [resolvable:$true] %s59_s14 }
   0xf   :  { %65 = dma.hbm_to_vmem [thread:$0]  %s58_s10, 2048, %s60_s14, [#allocation9], %s401_s26, %s401_s26, %s402_s27  }
  0x10   :  { %392 = dma.done.wait [#allocation3], 256  }
  0x11   :  { %393 = vsyncadd [#allocation3], 4294967040 }
  0x12   :  { %394 = dma.done.wait [#allocation6], 4128  }
  0x13   :  { %395 = vsyncadd [#allocation6], 4294963168 }
  0x14   :  { %396 = dma.done.wait [#allocation9], 2048  }
  0x15   :  { %397 = vsyncadd [#allocation9], 4294965248  ;;  %v101_v0 = vld [vmem:[#allocation5 + $0x78] sm:$0xff]  ;;  %v100_v1 = vld [vmem:[#allocation5 + $0x70] sm:$0xff]  ;;  %s408_s15 = smov [#allocation10]   ;;  %s229_s19 = sshll.u32 %s474_s5, 4  ;;  %s230_s19 = int_to_ptr.hbm [resolvable:$true] %s229_s19 }
  0x16   :  { %106 = vmatpush.msra.mxu0 %v101_v0  ;;  %244 = vmatpush.msra.mxu3 %v101_v0  ;;  %v99_v2 = vld [vmem:[#allocation5 + $0x68] sm:$0xff]  ;;  %v98_v3 = vld [vmem:[#allocation5 + $0x60] sm:$0xff]  ;;  %v97_v4 = vld [vmem:[#allocation5 + $0x58] sm:$0xff]  ;;  %s227_s16 = sshll.u32 %s408_s15, 4  ;;  %s228_s16 = int_to_ptr.vmem [resolvable:$true] %s227_s16 }
  0x17   :  { %v147_v5 = vld [vmem:[#allocation5 + $0xf8] sm:$0xff]  ;;  %v146_v6 = vld [vmem:[#allocation5 + $0xf0] sm:$0xff]  ;;  %v145_v8 = vld [vmem:[#allocation5 + $0xe8] sm:$0xff] }
  0x18   :  { %107 = vmatpush.msra.mxu0 %v100_v1  ;;  %245 = vmatpush.msra.mxu3 %v100_v1  ;;  %v96_v7 = vld [vmem:[#allocation5 + $0x50] sm:$0xff]  ;;  %v95_v9 = vld [vmem:[#allocation5 + $0x48] sm:$0xff]  ;;  %v144_v10 = vld [vmem:[#allocation5 + $0xe0] sm:$0xff] }
  0x19   :  { %153 = vmatpush.msra.mxu1 %v147_v5  ;;  %v94_v11 = vld [vmem:[#allocation5 + $0x40] sm:$0xff]  ;;  %v143_v12 = vld [vmem:[#allocation5 + $0xd8] sm:$0xff]  ;;  %v142_v14 = vld [vmem:[#allocation5 + $0xd0] sm:$0xff] }
  0x1a   :  { %108 = vmatpush.msra.mxu0 %v99_v2  ;;  %246 = vmatpush.msra.mxu3 %v99_v2  ;;  %v93_v13 = vld [vmem:[#allocation5 + $0x38] sm:$0xff]  ;;  %v92_v15 = vld [vmem:[#allocation5 + $0x30] sm:$0xff]  ;;  %v141_v16 = vld [vmem:[#allocation5 + $0xc8] sm:$0xff] }
  0x1b   :  { %154 = vmatpush.msra.mxu1 %v146_v6  ;;  %v91_v17 = vld [vmem:[#allocation5 + $0x28] sm:$0xff]  ;;  %v140_v18 = vld [vmem:[#allocation5 + $0xc0] sm:$0xff]  ;;  %v139_v20 = vld [vmem:[#allocation5 + $0xb8] sm:$0xff] }
  0x1c   :  { %109 = vmatpush.msra.mxu0 %v98_v3  ;;  %247 = vmatpush.msra.mxu3 %v98_v3  ;;  %v90_v19 = vld [vmem:[#allocation5 + $0x20] sm:$0xff]  ;;  %v89_v21 = vld [vmem:[#allocation5 + $0x18] sm:$0xff]  ;;  %v138_v22 = vld [vmem:[#allocation5 + $0xb0] sm:$0xff] }
  0x1d   :  { %155 = vmatpush.msra.mxu1 %v145_v8  ;;  %v88_v23 = vld [vmem:[#allocation5 + $0x10] sm:$0xff]  ;;  %v137_v24 = vld [vmem:[#allocation5 + $0xa8] sm:$0xff]  ;;  %v136_v26 = vld [vmem:[#allocation5 + $0xa0] sm:$0xff] }
  0x1e   :  { %110 = vmatpush.msra.mxu0 %v97_v4  ;;  %248 = vmatpush.msra.mxu3 %v97_v4  ;;  %v87_v25 = vld [vmem:[#allocation5 + $0x8] sm:$0xff]  ;;  %v86_v27 = vld [vmem:[#allocation5] sm:$0xff]  ;;  %v84_v28 = vld [vmem:[#allocation2] sm:$0xff] }
  0x1f   :  { %156 = vmatpush.msra.mxu1 %v144_v10  ;;  %v85_v29 = vld [vmem:[#allocation2 + $0x8] sm:$0xff]  ;;  %v134_v31 = vld [vmem:[#allocation5 + $0x90] sm:$0xff]  ;;  %v133_v32 = vld [vmem:[#allocation5 + $0x88] sm:$0xff] }
  0x20   :  { %111 = vmatpush.msra.mxu0 %v96_v7  ;;  %249 = vmatpush.msra.mxu3 %v96_v7  ;;  %v135_v30 = vld [vmem:[#allocation5 + $0x98] sm:$0xff]  ;;  %v132_v33 = vld [vmem:[#allocation5 + $0x80] sm:$0xff]  ;;  %v191_v36 = vld [vmem:[#allocation8 + $0x68] sm:$0xff] }
  0x21   :  { %157 = vmatpush.msra.mxu1 %v143_v12  ;;  %v193_v34 = vld [vmem:[#allocation8 + $0x78] sm:$0xff]  ;;  %v192_v35 = vld [vmem:[#allocation8 + $0x70] sm:$0xff]  ;;  %v190_v37 = vld [vmem:[#allocation8 + $0x60] sm:$0xff] }
  0x22   :  { %112 = vmatpush.msra.mxu0 %v95_v9  ;;  %250 = vmatpush.msra.mxu3 %v95_v9  ;;  %v189_v38 = vld [vmem:[#allocation8 + $0x58] sm:$0xff]  ;;  %v188_v39 = vld [vmem:[#allocation8 + $0x50] sm:$0xff]  ;;  %v187_v40 = vld [vmem:[#allocation8 + $0x48] sm:$0xff] }
  0x23   :  { %158 = vmatpush.msra.mxu1 %v142_v14  ;;  %198 = vmatpush.msra.mxu2 %v193_v34  ;;  %v186_v41 = vld [vmem:[#allocation8 + $0x40] sm:$0xff]  ;;  %v185_v42 = vld [vmem:[#allocation8 + $0x38] sm:$0xff]  ;;  %v184_v44 = vld [vmem:[#allocation8 + $0x30] sm:$0xff] }
  0x24   :  { %113 = vmatpush.msra.mxu0 %v94_v11  ;;  %251 = vmatpush.msra.mxu3 %v94_v11  ;;  %v269_v43 = vld [vmem:[#allocation7] ss:$0 sm:$0xff]  ;;  %v183_v45 = vld [vmem:[#allocation8 + $0x28] sm:$0xff]  ;;  %v182_v48 = vld [vmem:[#allocation8 + $0x20] sm:$0xff] }
  0x25   :  { %159 = vmatpush.msra.mxu1 %v141_v16  ;;  %199 = vmatpush.msra.mxu2 %v192_v35  ;;  %v181_v50 = vld [vmem:[#allocation8 + $0x18] sm:$0xff]  ;;  %v180_v54 = vld [vmem:[#allocation8 + $0x10] sm:$0xff]  ;;  %v179_v55 = vld [vmem:[#allocation8 + $0x8] sm:$0xff] }
  0x26   :  { %114 = vmatpush.msra.mxu0 %v93_v13  ;;  %252 = vmatpush.msra.mxu3 %v93_v13  ;;  %v178_v56 = vld [vmem:[#allocation8] sm:$0xff]  ;;  %v270_v57 = vld [vmem:[#allocation7 + $0x1] ss:$0 sm:$0xff]  ;;  %v271_v0 = vld [vmem:[%s473_s4] ss:$0 sm:$0xff] }
  0x27   :  { %160 = vmatpush.msra.mxu1 %v140_v18  ;;  %200 = vmatpush.msra.mxu2 %v191_v36 }
  0x28   :  { %115 = vmatpush.msra.mxu0 %v92_v15  ;;  %253 = vmatpush.msra.mxu3 %v92_v15 }
  0x29   :  { %161 = vmatpush.msra.mxu1 %v139_v20  ;;  %201 = vmatpush.msra.mxu2 %v190_v37 }
  0x2a   :  { %116 = vmatpush.msra.mxu0 %v91_v17  ;;  %254 = vmatpush.msra.mxu3 %v91_v17 }
  0x2b   :  { %162 = vmatpush.msra.mxu1 %v138_v22  ;;  %202 = vmatpush.msra.mxu2 %v189_v38 }
  0x2c   :  { %117 = vmatpush.msra.mxu0 %v90_v19  ;;  %255 = vmatpush.msra.mxu3 %v90_v19 }
  0x2d   :  { %163 = vmatpush.msra.mxu1 %v137_v24  ;;  %203 = vmatpush.msra.mxu2 %v188_v39 }
  0x2e   :  { %118 = vmatpush.msra.mxu0 %v89_v21  ;;  %256 = vmatpush.msra.mxu3 %v89_v21 }
  0x2f   :  { %164 = vmatpush.msra.mxu1 %v136_v26  ;;  %204 = vmatpush.msra.mxu2 %v187_v40 }
  0x30   :  { %119 = vmatpush.msra.mxu0 %v88_v23  ;;  %257 = vmatpush.msra.mxu3 %v88_v23 }
  0x31   :  { %165 = vmatpush.msra.mxu1 %v135_v30  ;;  %205 = vmatpush.msra.mxu2 %v186_v41 }
  0x32   :  { %120 = vmatpush.msra.mxu0 %v87_v25  ;;  %258 = vmatpush.msra.mxu3 %v87_v25 }
  0x33   :  { %166 = vmatpush.msra.mxu1 %v134_v31  ;;  %206 = vmatpush.msra.mxu2 %v185_v42 }
  0x34   :  { %121 = vmatpush.msra.mxu0 %v86_v27  ;;  %259 = vmatpush.msra.mxu3 %v86_v27 }
  0x35   :  { %122 = vmatmul.f32.vlgmr.msra.gmra.mxu0 %v84_v28  ;;  %125 = vmatmul.f32.vlgmr.msra.gmra.mxu3 %v85_v29 }
  0x36   :  { %167 = vmatpush.msra.mxu1 %v133_v32  ;;  %207 = vmatpush.msra.mxu2 %v184_v44 }
  0x38   :  { %168 = vmatpush.msra.mxu1 %v132_v33  ;;  %208 = vmatpush.msra.mxu2 %v183_v45 }
  0x3a   :  { %209 = vmatpush.msra.mxu2 %v182_v48 }
  0x3c   :  { %210 = vmatpush.msra.mxu2 %v181_v50 }
  0x3e   :  { %211 = vmatpush.msra.mxu2 %v180_v54 }
  0x40   :  { %212 = vmatpush.msra.mxu2 %v179_v55 }
  0x42   :  { %213 = vmatpush.msra.mxu2 %v178_v56 }
  0xb2   :  { %v123_v46 = vpop.f32.mrf.mxu0 }
  0xb3   :  { %v124_v47 = vadd.f32 %v269_v43, %v123_v46 }
  0xb5   :  { %v129_v49 = vmax.f32 %v124_v47, 0.0 }
  0xb7   :  { %169 = vmatmul.f32.vlgmr.msra.gmra.mxu1 %v129_v49 }
  0xb8   :  { %v126_v51 = vpop.f32.mrf.mxu3 }
  0xb9   :  { %v127_v52 = vadd.f32 %v269_v43, %v126_v51 }
  0xbb   :  { %v130_v53 = vmax.f32 %v127_v52, 0.0 }
  0xbf   :  { %172 = vmatmul.f32.gmra.mxu1 %v130_v53 }
 0x134   :  { %v170_v58 = vpop.f32.mrf.mxu1 }
 0x135   :  { %v171_v59 = vadd.f32 %v270_v57, %v170_v58 }
 0x137   :  { %v176_v60 = vmax.f32 %v171_v59, 0.0 }
 0x139   :  { %214 = vmatmul.f32.vlgmr.msra.gmra.mxu2 %v176_v60 }
 0x13c   :  { %v173_v61 = vpop.f32.mrf.mxu1 }
 0x13d   :  { %v174_v62 = vadd.f32 %v270_v57, %v173_v61 }
 0x13f   :  { %v177_v63 = vmax.f32 %v174_v62, 0.0 }
 0x141   :  { %217 = vmatmul.f32.gmra.mxu2 %v177_v63 }
 0x1bc   :  { %v215_v1 = vpop.f32.mrf.mxu2 }
 0x1bd   :  { %v216_v2 = vadd.f32 %v271_v0, %v215_v1 }
 0x1bf   :  { %221 = vst [vmem:[#allocation10] sm:$0xff] %v216_v2 }
 0x1c4   :  { %v218_v3 = vpop.f32.mrf.mxu2 }
 0x1c5   :  { %v219_v4 = vadd.f32 %v271_v0, %v218_v3 }
 0x1c7   :  { %222 = vst [vmem:[#allocation10 + $0x8] sm:$0xff] %v219_v4 }
 0x1c8   :  { %235 = dma.vmem_to_hbm [thread:$0]  %s228_s16, 256, %s230_s19, [#allocation4], %s401_s26, %s401_s26, %s402_s27  }
 0x1c9   :  { %398 = dma.done.wait [#allocation4], 256  }
 0x1ca   :  { %399 = vsyncadd [#allocation4], 4294967040 }
 0x1cb   :  { %240 = vsyncpa [#allocation3], 1 }
 0x1cc   :  { %241 = vsyncpa [#allocation6], 1 }
 0x1cd   :  { %242 = vsyncpa [#allocation9], 1 }
 0x1ce   :  { %243 = vsyncpa [#allocation4], 1 }

</bundles_post_ra>
